<compile_context>
chip_gen: v7x
topology: tpu7x:2x2x1
jax: 0.10.0
libtpu: 0.0.40
codegen_flags: <defaults>
</compile_context>

<pallas_src>
import jax
import jax.numpy as jnp
from jax.experimental import pallas as pl
from jax.experimental.pallas import tpu as pltpu

# ---------------- synthetic FLAME configuration (small) ----------------
B = 2               # batch
V = 256             # number of vertices
N_SHAPE = 16        # shape params
N_EXP = 8           # expression params
N_POSE_FEATS = 36   # 4 driving joints * 9 (matches posedirs feature dim)
N_JOINTS = 5        # global, neck, jaw, eye_l, eye_r
N_FACES = 400
N_LMK = 68
PARENTS_LBS = [-1, 0, 1, 1, 1]

K_ALL = N_SHAPE + N_EXP + N_POSE_FEATS          # 60 blend features
BC = 3 * B                                      # 6  xyz rows for all batches
GS = ((BC + 7) // 8) * 8                        # 8  sublane-aligned row group
LMK_LANES = 256                                 # 3*68 = 204 padded lane-dense


# ======================= single fused Pallas kernel ===============================
#
# Row layouts (all f32, V on the lane axis):
#   xrep  (3*GS, V): row c'*GS + b*3 + c  = v_to_skin coordinate c' of batch b
#   rows  (4*GS, V): row c'*GS + b*3 + c  = sum_j w[v,j] * A[b,j,c,c']          (rot)
#                    row 3*GS + b*3 + c   = sum_j w[v,j] * A[b,j,c,3] + transl  (trans)
#   verts (BC,  V) : row b*3 + c          = pred_verts[b, v, c]

def _flame_fused_kernel(lhs_ref, a_ref, vtrep_ref, dirs_ref, waug_ref,
                        sel_ref, bary_ref, smat_ref, out_ref, lmk_ref):
    # blendshapes (shape | expr | pose-corrective) -> v_to_skin, already replicated
    # into the three c' groups the skinning FMAs need.
    xrep = vtrep_ref[...] + jnp.dot(lhs_ref[...], dirs_ref[...],
                                    preferred_element_type=jnp.float32)      # (3GS, V)
    # per-vertex LBS transform rows + translation rows (transl folded via ones column)
    rows = jnp.dot(a_ref[...], waug_ref[...],
                   preferred_element_type=jnp.float32)                        # (4GS, V)
    prod = rows[0:3 * GS, :] * xrep                                           # (3GS, V)
    verts = (prod[0:BC, :] + prod[GS:GS + BC, :] + prod[2 * GS:2 * GS + BC, :]
             + rows[3 * GS:3 * GS + BC, :])                                   # (BC, V)
    out_ref[...] = verts
    # landmarks, module semantics: einsum('ijk,ik->ij', tri_verts, bary)
    g = jnp.dot(verts, sel_ref[...], preferred_element_type=jnp.float32)      # (BC, 256)
    lmk_ref[...] = jnp.dot(smat_ref[...], g * bary_ref[...],
                           preferred_element_type=jnp.float32)                # (B, 256)


def flame_fused_pallas(lhs_big, a_rows, vt_rep, dirs_exp, w_aug, sel, bary_t, sum_mat):
    vspec = pl.BlockSpec(memory_space=pltpu.MemorySpace.VMEM)
    return pl.pallas_call(
        _flame_fused_kernel,
        out_shape=(jax.ShapeDtypeStruct((BC, V), jnp.float32),
                   jax.ShapeDtypeStruct((B, LMK_LANES), jnp.float32)),
        in_specs=[vspec] * 8,
        out_specs=(vspec, vspec),
    )(lhs_big, a_rows, vt_rep, dirs_exp, w_aug, sel, bary_t, sum_mat)


# ======================= plain-JAX glue (tiny per-joint math) =======================

def rotation_6d_to_matrix_jax(d6):
    a1, a2 = d6[..., :3], d6[..., 3:]
    b1 = a1 / jnp.linalg.norm(a1, axis=-1, keepdims=True)
    b2 = a2 - jnp.sum(b1 * a2, axis=-1, keepdims=True) * b1
    b2 = b2 / jnp.linalg.norm(b2, axis=-1, keepdims=True)
    b3 = jnp.cross(b1, b2)
    return jnp.stack([b1, b2, b3], axis=-2)


def batch_rodrigues_jax(rot_vecs, epsilon=1e-8):
    B_ = rot_vecs.shape[0]
    angle = jnp.linalg.norm(rot_vecs + epsilon, axis=1, keepdims=True)  # (B,1)
    rot_dir = rot_vecs / angle
    cos = jnp.cos(angle)[:, :, None]
    sin = jnp.sin(angle)[:, :, None]
    rx, ry, rz = rot_dir[:, 0], rot_dir[:, 1], rot_dir[:, 2]
    zeros = jnp.zeros((B_,), dtype=rot_vecs.dtype)
    K = jnp.stack([zeros, -rz, ry, rz, zeros, -rx, -ry, rx, zeros],
                  axis=1).reshape(B_, 3, 3)
    ident = jnp.eye(3, dtype=rot_vecs.dtype)[None]
    return ident + sin * K + (1.0 - cos) * jnp.matmul(K, K)


def batch_rigid_transform_jax(rot_mats, joints, parents):
    # rot_mats (B, J, 3, 3), joints (B, J, 3), parents: python list (static)
    B_, J = joints.shape[0], joints.shape[1]
    rel = [joints[:, 0]]
    for i in range(1, J):
        rel.append(joints[:, i] - joints[:, parents[i]])

    def tmat(R, t):
        top = jnp.concatenate([R, t[:, :, None]], axis=2)               # (B,3,4)
        bottom = jnp.broadcast_to(
            jnp.array([0., 0., 0., 1.], jnp.float32), (B_, 1, 4))
        return jnp.concatenate([top, bottom], axis=1)                   # (B,4,4)

    tmats = [tmat(rot_mats[:, i], rel[i]) for i in range(J)]
    chain = [tmats[0]]
    for i in range(1, J):
        chain.append(jnp.matmul(chain[parents[i]], tmats[i]))
    transforms = jnp.stack(chain, axis=1)                               # (B,J,4,4)
    posed_joints = transforms[:, :, :3, 3]
    joints_h = jnp.concatenate(
        [joints, jnp.zeros((B_, J, 1), jnp.float32)], axis=2)[..., None]  # (B,J,4,1)
    corr = jnp.matmul(transforms, joints_h)                             # (B,J,4,1)
    pad = jnp.concatenate([jnp.zeros((B_, J, 4, 3), jnp.float32), corr], axis=3)
    rel_transforms = transforms - pad
    return posed_joints, rel_transforms


# ======================= FLAME forward (Pallas path) =======================

def flame_forward_pallas(model, shape_params, expression_params, pose_params,
                         eye_pose_params, jaw_pose_params, neck_pose_params, transl):
    B_ = shape_params.shape[0]
    f32 = jnp.float32
    eye3 = jnp.eye(3, dtype=f32)

    # --- rotations: the module forward zeroes neck/jaw/eye poses, so joints 1..4 are
    #     identity (to within Rodrigues' 1e-8 epsilon) and pose_feature == 0.
    global_rot = rotation_6d_to_matrix_jax(pose_params)                      # (B,3,3)
    rot_mats = jnp.concatenate(
        [global_rot[:, None], jnp.broadcast_to(eye3, (B_, 4, 3, 3))], axis=1)  # (B,5,3,3)
    pose_feat = jnp.zeros((B_, N_POSE_FEATS), f32)

    # --- LBS joints regressed directly from the params (linearity of blendshapes) ---
    p_se = jnp.concatenate([shape_params, expression_params], axis=1)        # (B,24)
    J_lbs = model['J_rest'][None] + jnp.dot(
        p_se, model['Jdirs_se']).reshape(B_, N_JOINTS, 3)                    # (B,5,3)

    # --- tiny 5-joint kinematic chain (plain JAX; feeds kernel inputs only) ---
    _, A_global = batch_rigid_transform_jax(rot_mats, J_lbs, PARENTS_LBS)    # (B,5,4,4)

    # --- kernel lhs: block-diagonal params replicated into the 3 skinning groups ---
    p_all = jnp.concatenate([p_se, pose_feat], axis=1)                       # (B,60)
    lhs = jnp.einsum('bk,cd->bcdk', p_all, eye3).reshape(B_, 3, 3 * K_ALL)   # (B,3,180)
    lhs = jnp.transpose(lhs, (1, 0, 2))                                      # (c',B,180)
    lhs = jnp.broadcast_to(lhs[:, :, None, :], (3, B_, 3, 3 * K_ALL))
    lhs = lhs.reshape(3, B_ * 3, 3 * K_ALL)
    lhs_big = jnp.pad(lhs, ((0, 0), (0, GS - 3 * B_), (0, 0))
                      ).reshape(3 * GS, 3 * K_ALL)                           # (3GS,180)

    # --- skinning rows: A reorganised for dense slab FMAs; transl folded in ---
    Arot = A_global[:, :, :3, :3]                                            # (B,5,3,3)
    At = A_global[:, :, :3, 3]                                               # (B,5,3)
    rotr = jnp.transpose(Arot, (3, 0, 2, 1)).reshape(3, B_ * 3, N_JOINTS)    # (c',bc,j)
    rotr = jnp.pad(rotr, ((0, 0), (0, GS - 3 * B_), (0, 1)))                 # (3,GS,6)
    trs = jnp.concatenate([jnp.transpose(At, (0, 2, 1)),
                           transl[:, :, None]], axis=2).reshape(B_ * 3, 6)
    trs = jnp.pad(trs, ((0, GS - 3 * B_), (0, 0)))[None]                     # (1,GS,6)
    a_rows = jnp.concatenate([rotr, trs], axis=0).reshape(4 * GS, 6)         # (4GS,6)

    # --- single fused kernel: blendshapes + LBS + translation + landmarks ---
    verts_cv, lmk_flat = flame_fused_pallas(
        lhs_big, a_rows, model['vt_rep'], model['dirs_exp'], model['w_aug'],
        model['lmk_sel'], model['lmk_bary_t'], model['sum_mat'])

    pred_verts = jnp.transpose(verts_cv.reshape(B_, 3, V), (0, 2, 1))        # (B,V,3)
    pred_landmarks = lmk_flat[:, :3 * N_LMK].reshape(B_, N_LMK, 3)
    return pred_verts, pred_landmarks


# ======================= pure-JAX reference (mirrors the torch forward) =============

def flame_forward_reference(model, shape_params, expression_params, pose_params,
                            eye_pose_params, jaw_pose_params, neck_pose_params, transl):
    B_ = shape_params.shape[0]
    shape_off = jnp.einsum('bS,VCS->bVC', shape_params, model['shapedirs'])
    v_shaped = model['v_template'][None] + shape_off
    expr_off = jnp.einsum('bE,VCE->bVC', expression_params, model['expressedirs'])
    v_expressed = v_shaped + expr_off
    J_lbs = jnp.einsum('JV,BVC->BJC', model['J_regressor'], v_expressed)

    debug_neck = jnp.zeros_like(neck_pose_params)
    debug_jaw = jnp.zeros_like(jaw_pose_params)
    debug_eye = jnp.zeros_like(eye_pose_params)
    global_rot = rotation_6d_to_matrix_jax(pose_params)
    rot_mats = jnp.stack([global_rot,
                          batch_rodrigues_jax(debug_neck),
                          batch_rodrigues_jax(debug_jaw),
                          batch_rodrigues_jax(debug_eye[:, :3]),
                          batch_rodrigues_jax(debug_eye[:, 3:])], axis=1)
    _, A_global = batch_rigid_transform_jax(rot_mats, J_lbs, PARENTS_LBS)
    pose_feat = (rot_mats[:, 1:5] - jnp.eye(3, dtype=jnp.float32)).reshape(B_, -1)
    pose_bs = jnp.einsum('BP,VPC->BVC', pose_feat, model['posedirs'])
    v_to_skin = v_expressed + pose_bs
    T = jnp.einsum('VJ,BJHW->BVHW', model['lbs_weights'], A_global)
    v_homo = jnp.concatenate(
        [v_to_skin, jnp.ones((B_, v_to_skin.shape[1], 1), jnp.float32)], axis=2)
    v_posed = jnp.einsum('BVHW,BVW->BVH', T, v_homo)[:, :, :3]
    pred_verts = v_posed + transl[:, None, :]

    # landmark op exactly as the torch module: einsum('ijk,ik->ij', tri_verts, bary)
    tri_idx = model['faces_idx'][model['landmark_face_idx']]   # (68, 3)
    lmks = []
    for b in range(B_):
        tri_verts = pred_verts[b][tri_idx]                     # (68, 3, 3)
        lmks.append(jnp.einsum('ijk,ik->ij', tri_verts, model['landmark_b_coords']))
    return pred_verts, jnp.stack(lmks, axis=0)


# ======================= deterministic model + inputs =======================

def build_model(key):
    ks = jax.random.split(key, 8)
    f32 = jnp.float32
    v_template = jax.random.normal(ks[0], (V, 3), f32)
    shapedirs = 0.01 * jax.random.normal(ks[1], (V, 3, N_SHAPE), f32)
    expressedirs = 0.01 * jax.random.normal(ks[2], (V, 3, N_EXP), f32)
    posedirs = 0.01 * jax.random.normal(ks[3], (V, N_POSE_FEATS, 3), f32)
    J_regressor = jax.nn.softmax(
        jax.random.normal(ks[4], (N_JOINTS, V), f32), axis=1)
    lbs_weights = jax.nn.softmax(
        jax.random.normal(ks[5], (V, N_JOINTS), f32), axis=1)
    # deterministic non-degenerate triangles
    fi = jnp.arange(N_FACES)
    faces_idx = jnp.stack([fi % V, (fi + 1) % V, (fi + 2) % V], axis=1)
    landmark_face_idx = (jnp.arange(N_LMK) * 5) % N_FACES
    landmark_b_coords = jax.nn.softmax(
        jax.random.normal(ks[6], (N_LMK, 3), f32), axis=1)

    # ---- precomputed Pallas-layout constants (hoisted out of the forward) ----
    # merged blendshape basis, rows indexed c*60 + k (k: shape | expr | pose feats)
    sd = jnp.transpose(shapedirs, (1, 2, 0))       # (3, S, V)
    ed = jnp.transpose(expressedirs, (1, 2, 0))    # (3, E, V)
    pd = jnp.transpose(posedirs, (2, 1, 0))        # (3, P, V)
    dirs_exp = jnp.concatenate([sd, ed, pd], axis=1).reshape(3 * K_ALL, V)
    # v_template replicated into the GS-aligned row groups used by the kernel
    vt_rep = jnp.repeat(v_template.T, GS, axis=0)                  # (3*GS, V)
    # augmented LBS weight matrix: [W^T ; ones] -> translation/transl column folds in
    w_aug = jnp.concatenate([lbs_weights.T, jnp.ones((1, V), f32)], axis=0)  # (6, V)
    # joint regression as a function of the (shape|expr) params
    Jdirs_se = jnp.concatenate([
        jnp.einsum('jv,vcs->sjc', J_regressor, shapedirs).reshape(N_SHAPE, 3 * N_JOINTS),
        jnp.einsum('jv,vce->ejc', J_regressor, expressedirs).reshape(N_EXP, 3 * N_JOINTS),
    ], axis=0)                                                     # (24, 15)
    J_rest = jnp.dot(J_regressor, v_template)                      # (5, 3)
    # landmark selection: sel[v, 3i+j] = 1 iff v == faces[lmk_face[i], j]; lane-padded
    tri = faces_idx[landmark_face_idx]                             # (68, 3)
    lmk_sel = jnp.zeros((V, 3 * N_LMK), f32).at[
        tri.reshape(-1), jnp.arange(3 * N_LMK)].set(1.0)
    lmk_sel = jnp.pad(lmk_sel, ((0, 0), (0, LMK_LANES - 3 * N_LMK)))
    # per-coordinate barycentric weights tiled per batch: [b*3+c, 3i+j] = bary[i, c]
    bary_base = jnp.repeat(landmark_b_coords.T, 3, axis=1)         # (3, 204)
    lmk_bary_t = jnp.pad(jnp.tile(bary_base, (B, 1)),
                         ((0, 0), (0, LMK_LANES - 3 * N_LMK)))     # (BC, 256)
    # sums the 3 xyz rows of each batch: (B, BC)
    sum_mat = jnp.repeat(jnp.eye(B, dtype=f32), 3, axis=1)

    return dict(v_template=v_template, shapedirs=shapedirs,
                expressedirs=expressedirs, posedirs=posedirs,
                J_regressor=J_regressor, lbs_weights=lbs_weights,
                faces_idx=faces_idx, landmark_face_idx=landmark_face_idx,
                landmark_b_coords=landmark_b_coords,
                dirs_exp=dirs_exp, vt_rep=vt_rep, w_aug=w_aug,
                Jdirs_se=Jdirs_se, J_rest=J_rest,
                lmk_sel=lmk_sel, lmk_bary_t=lmk_bary_t, sum_mat=sum_mat)


if __name__ == "__main__":
    key = jax.random.PRNGKey(0)
    k_model, k_in = jax.random.split(key)
    model = build_model(k_model)

    kin = jax.random.split(k_in, 7)
    shape_params = jax.random.normal(kin[0], (B, N_SHAPE), jnp.float32)
    expression_params = jax.random.normal(kin[1], (B, N_EXP), jnp.float32)
    pose_params = jax.random.normal(kin[2], (B, 6), jnp.float32)      # global 6D pose
    neck_pose_params = jax.random.normal(kin[3], (B, 3), jnp.float32)
    jaw_pose_params = jax.random.normal(kin[4], (B, 3), jnp.float32)
    eye_pose_params = jax.random.normal(kin[5], (B, 6), jnp.float32)
    transl = 0.1 * jax.random.normal(kin[6], (B, 3), jnp.float32)

    fwd = jax.jit(flame_forward_pallas)
    pred_verts, pred_landmarks = fwd(
        model, shape_params, expression_params, pose_params,
        eye_pose_params, jaw_pose_params, neck_pose_params, transl)
    pred_verts = jax.block_until_ready(pred_verts)
    pred_landmarks = jax.block_until_ready(pred_landmarks)

    ref_verts, ref_landmarks = flame_forward_reference(
        model, shape_params, expression_params, pose_params,
        eye_pose_params, jaw_pose_params, neck_pose_params, transl)

    assert pred_verts.shape == (B, V, 3)
    assert pred_landmarks.shape == (B, N_LMK, 3)
    err_v = float(jnp.max(jnp.abs(pred_verts - ref_verts)))
    err_l = float(jnp.max(jnp.abs(pred_landmarks - ref_landmarks)))
    assert err_v < 2e-3 and err_l < 2e-3, (err_v, err_l)

    print("KERNEL_OK")
</pallas_src>

<mosaic_0001>
module attributes {stable_mosaic.version = 11 : i64} {
  func.func @_flame_fused_kernel(%arg0: memref<24x180xf32, #tpu.memory_space<vmem>>, %arg1: memref<32x6xf32, #tpu.memory_space<vmem>>, %arg2: memref<24x256xf32, #tpu.memory_space<vmem>>, %arg3: memref<180x256xf32, #tpu.memory_space<vmem>>, %arg4: memref<6x256xf32, #tpu.memory_space<vmem>>, %arg5: memref<256x256xf32, #tpu.memory_space<vmem>>, %arg6: memref<6x256xf32, #tpu.memory_space<vmem>>, %arg7: memref<2x6xf32, #tpu.memory_space<vmem>>, %arg8: memref<6x256xf32, #tpu.memory_space<vmem>>, %arg9: memref<2x256xf32, #tpu.memory_space<vmem>>) attributes {dimension_semantics = [], scalar_prefetch = 0 : i64, scratch_operands = 0 : i64, tpu.core_type = #tpu.core_type<tc>} {
    %c0 = arith.constant 0 : index
    %c0_0 = arith.constant 0 : index
    %0 = vector.load %arg2[%c0, %c0_0] : memref<24x256xf32, #tpu.memory_space<vmem>>, vector<24x256xf32>
    %c0_1 = arith.constant 0 : index
    %c0_2 = arith.constant 0 : index
    %1 = vector.load %arg0[%c0_1, %c0_2] : memref<24x180xf32, #tpu.memory_space<vmem>>, vector<24x180xf32>
    %c0_3 = arith.constant 0 : index
    %c0_4 = arith.constant 0 : index
    %2 = vector.load %arg3[%c0_3, %c0_4] : memref<180x256xf32, #tpu.memory_space<vmem>>, vector<180x256xf32>
    %cst = arith.constant dense<0.000000e+00> : vector<24x256xf32>
    %3 = tpu.matmul %1, %2, %cst {dimension_numbers = #tpu.dot_dimension_numbers<[1], [0], [0], [1], [0, 0, 1, 1], [], []>} : vector<24x180xf32>, vector<180x256xf32>, vector<24x256xf32> -> vector<24x256xf32>
    %4 = arith.addf %0, %3 : vector<24x256xf32>
    %c0_5 = arith.constant 0 : index
    %c0_6 = arith.constant 0 : index
    %5 = vector.load %arg1[%c0_5, %c0_6] : memref<32x6xf32, #tpu.memory_space<vmem>>, vector<32x6xf32>
    %c0_7 = arith.constant 0 : index
    %c0_8 = arith.constant 0 : index
    %6 = vector.load %arg4[%c0_7, %c0_8] : memref<6x256xf32, #tpu.memory_space<vmem>>, vector<6x256xf32>
    %cst_9 = arith.constant dense<0.000000e+00> : vector<32x256xf32>
    %7 = tpu.matmul %5, %6, %cst_9 {dimension_numbers = #tpu.dot_dimension_numbers<[1], [0], [0], [1], [0, 0, 1, 1], [], []>} : vector<32x6xf32>, vector<6x256xf32>, vector<32x256xf32> -> vector<32x256xf32>
    %8 = vector.extract_strided_slice %7 {offsets = [0, 0], sizes = [24, 256], strides = [1, 1]} : vector<32x256xf32> to vector<24x256xf32>
    %9 = arith.mulf %8, %4 : vector<24x256xf32>
    %10 = vector.extract_strided_slice %9 {offsets = [0, 0], sizes = [6, 256], strides = [1, 1]} : vector<24x256xf32> to vector<6x256xf32>
    %11 = vector.extract_strided_slice %9 {offsets = [8, 0], sizes = [6, 256], strides = [1, 1]} : vector<24x256xf32> to vector<6x256xf32>
    %12 = arith.addf %10, %11 : vector<6x256xf32>
    %13 = vector.extract_strided_slice %9 {offsets = [16, 0], sizes = [6, 256], strides = [1, 1]} : vector<24x256xf32> to vector<6x256xf32>
    %14 = arith.addf %12, %13 : vector<6x256xf32>
    %15 = vector.extract_strided_slice %7 {offsets = [24, 0], sizes = [6, 256], strides = [1, 1]} : vector<32x256xf32> to vector<6x256xf32>
    %16 = arith.addf %14, %15 : vector<6x256xf32>
    %c0_10 = arith.constant 0 : index
    %c0_11 = arith.constant 0 : index
    %17 = vector.load %arg8[%c0_10, %c0_11] : memref<6x256xf32, #tpu.memory_space<vmem>>, vector<6x256xf32>
    tpu.vector_store %arg8[%c0_10, %c0_11], %16 {strides = array<i32>} : memref<6x256xf32, #tpu.memory_space<vmem>>, vector<6x256xf32>,
    %c0_12 = arith.constant 0 : index
    %c0_13 = arith.constant 0 : index
    %18 = vector.load %arg5[%c0_12, %c0_13] : memref<256x256xf32, #tpu.memory_space<vmem>>, vector<256x256xf32>
    %cst_14 = arith.constant dense<0.000000e+00> : vector<6x256xf32>
    %19 = tpu.matmul %16, %18, %cst_14 {dimension_numbers = #tpu.dot_dimension_numbers<[1], [0], [0], [1], [0, 0, 1, 1], [], []>} : vector<6x256xf32>, vector<256x256xf32>, vector<6x256xf32> -> vector<6x256xf32>
    %c0_15 = arith.constant 0 : index
    %c0_16 = arith.constant 0 : index
    %20 = vector.load %arg7[%c0_15, %c0_16] : memref<2x6xf32, #tpu.memory_space<vmem>>, vector<2x6xf32>
    %c0_17 = arith.constant 0 : index
    %c0_18 = arith.constant 0 : index
    %21 = vector.load %arg6[%c0_17, %c0_18] : memref<6x256xf32, #tpu.memory_space<vmem>>, vector<6x256xf32>
    %22 = arith.mulf %19, %21 : vector<6x256xf32>
    %cst_19 = arith.constant dense<0.000000e+00> : vector<2x256xf32>
    %23 = tpu.matmul %20, %22, %cst_19 {dimension_numbers = #tpu.dot_dimension_numbers<[1], [0], [0], [1], [0, 0, 1, 1], [], []>} : vector<2x6xf32>, vector<6x256xf32>, vector<2x256xf32> -> vector<2x256xf32>
    %c0_20 = arith.constant 0 : index
    %c0_21 = arith.constant 0 : index
    %24 = vector.load %arg9[%c0_20, %c0_21] : memref<2x256xf32, #tpu.memory_space<vmem>>, vector<2x256xf32>
    tpu.vector_store %arg9[%c0_20, %c0_21], %23 {strides = array<i32>} : memref<2x256xf32, #tpu.memory_space<vmem>>, vector<2x256xf32>,
    return
  }
}

</mosaic_0001>

<bundles_post_ra>
// kernel: flame_forward_pallas.1
= control target key start
LH: loop header
LB: loop body
LE: loop exit
PB: predicated region body
PF: predicated region fallthrough
CT: control target
= control target key end

     0   :  { %v688_v3 = vmov 0.0   ;;  %vm89_vm0 = vcmask 424960   ;;  %vm214_vm1 = vcmask 1045504   ;;  %vm201_vm2 = vcmask 48128   ;;  %s1160_s3 = inlined_call_operand.vmem [shape: f32[180,256], index: 3, kind: input, shape index: {}]   ;;  %s1161_s0 = inlined_call_operand.vmem [shape: f32[24,180], index: 0, kind: input, shape index: {}]   ;;  %s1162_s4 = inlined_call_operand.vmem [shape: f32[6,256], index: 4, kind: input, shape index: {}]   ;;  %s1163_s1 = inlined_call_operand.vmem [shape: f32[32,6], index: 1, kind: input, shape index: {}]   ;;  %s1164_s5 = inlined_call_operand.vmem [shape: f32[256,256], index: 5, kind: input, shape index: {}]   ;;  %s1165_s2 = inlined_call_operand.vmem [shape: f32[24,256], index: 2, kind: input, shape index: {}]   ;;  %s1166_s8 = inlined_call_operand.vmem [shape: f32[6,256], index: 8, kind: output, shape index: {0}]   ;;  %s1167_s6 = inlined_call_operand.vmem [shape: f32[6,256], index: 6, kind: input, shape index: {}]   ;;  %s1168_s7 = inlined_call_operand.vmem [shape: f32[2,6], index: 7, kind: input, shape index: {}]   ;;  %s1169_s9 = inlined_call_operand.vmem [shape: f32[2,256], index: 9, kind: output, shape index: {1}]  }
   0x1   :  { %v44_v0 = vld [vmem:[%s1160_s3 + $0x8] sm:$0xff]  ;;  %v46_v1 = vld [vmem:[%s1160_s3 + $0x18] sm:$0xff]  ;;  %v43_v2 = vld [vmem:[%s1160_s3] sm:$0xff]  ;;  %285 = vmatprep.mubr.f32.mxu1 %v688_v3  ;;  %vm99_vm3 = vcmask 1043456  }
   0x2   :  { %v579_v4 = vpack.c.bf16 %v46_v1, %v44_v0  ;;  %v45_v5 = vld [vmem:[%s1160_s3 + $0x10] sm:$0xff]  ;;  %v48_v6 = vld [vmem:[%s1160_s3 + $0x28] sm:$0xff]  ;;  %v50_v7 = vld [vmem:[%s1160_s3 + $0x38] sm:$0xff] }
   0x3   :  { %v581_v8 = vpack.c.bf16 %v45_v5, %v43_v2  ;;  %v583_v9 = vpack.c.bf16 %v50_v7, %v48_v6  ;;  %v47_v10 = vld [vmem:[%s1160_s3 + $0x20] sm:$0xff]  ;;  %v49_v11 = vld [vmem:[%s1160_s3 + $0x30] sm:$0xff]  ;;  %v52_v12 = vld [vmem:[%s1160_s3 + $0x48] sm:$0xff] }
   0x4   :  { %580 = vmatprep.subr.bf16.mxu0 %v579_v4  ;;  %v54_v13 = vld [vmem:[%s1160_s3 + $0x58] sm:$0xff]  ;;  %v585_v14 = vpack.c.bf16 %v49_v11, %v47_v10  ;;  %v51_v16 = vld [vmem:[%s1160_s3 + $0x40] sm:$0xff]  ;;  %v53_v17 = vld [vmem:[%s1160_s3 + $0x50] sm:$0xff] }
   0x5   :  { %582 = vmatpush1.bf16.msra.mxu0 %v581_v8  ;;  %v587_v15 = vpack.c.bf16 %v54_v13, %v52_v12  ;;  %v56_v18 = vld [vmem:[%s1160_s3 + $0x68] sm:$0xff]  ;;  %v58_v19 = vld [vmem:[%s1160_s3 + $0x78] sm:$0xff]  ;;  %v589_v20 = vpack.c.bf16 %v53_v17, %v51_v16  ;;  %v55_v22 = vld [vmem:[%s1160_s3 + $0x60] sm:$0xff] }
   0x6   :  { %584 = vmatprep.subr.bf16.mxu0 %v583_v9  ;;  %v591_v21 = vpack.c.bf16 %v58_v19, %v56_v18  ;;  %v57_v23 = vld [vmem:[%s1160_s3 + $0x70] sm:$0xff]  ;;  %v60_v24 = vld [vmem:[%s1160_s3 + $0x88] sm:$0xff]  ;;  %v62_v25 = vld [vmem:[%s1160_s3 + $0x98] sm:$0xff] }
   0x7   :  { %v593_v26 = vpack.c.bf16 %v57_v23, %v55_v22  ;;  %v595_v27 = vpack.c.bf16 %v62_v25, %v60_v24  ;;  %v59_v28 = vld [vmem:[%s1160_s3 + $0x80] sm:$0xff]  ;;  %v61_v29 = vld [vmem:[%s1160_s3 + $0x90] sm:$0xff]  ;;  %v64_v30 = vld [vmem:[%s1160_s3 + $0xa8] sm:$0xff] }
   0x8   :  { %v66_v31 = vld [vmem:[%s1160_s3 + $0xb8] sm:$0xff]  ;;  %v38_v32 = vld [vmem:[%s1161_s0 + $0x8] sm:$0xff]  ;;  %v597_v34 = vpack.c.bf16 %v61_v29, %v59_v28  ;;  %v199_v35 = vld [vmem:[%s1162_s4] sm:$0x3f] }
   0x9   :  { %586 = vmatpush1.bf16.msra.mxu0 %v585_v14  ;;  %v200_v33 = vld [vmem:[%s1162_s4 + $0x8] sm:$0x3f]  ;;  %566 = vmatprep.mubr.msk.f32.mxu0 %vm89_vm0, %v38_v32  ;;  %v195_v36 = vld [vmem:[%s1163_s1] sm:$0xff]  ;;  %v599_v37 = vpack.c.bf16 %v66_v31, %v64_v30  ;;  %v65_v39 = vld [vmem:[%s1160_s3 + $0xb0] sm:$0xff] }
   0xa   :  { %588 = vmatprep.subr.bf16.mxu0 %v587_v15  ;;  %v63_v38 = vld [vmem:[%s1160_s3 + $0xa0] sm:$0xff]  ;;  %569 = vmatprep.subr.msk.mxu1 %vm214_vm1, %v200_v33  ;;  %v68_v40 = vld [vmem:[%s1160_s3 + $0xc8] sm:$0xff]  ;;  %v70_v41 = vld [vmem:[%s1160_s3 + $0xd8] sm:$0xff] }
   0xb   :  { %570 = vmatpush1.msk.msra.mxu1 %vm214_vm1, %v199_v35  ;;  %v67_v42 = vld [vmem:[%s1160_s3 + $0xc0] sm:$0xff]  ;;  %v196_v43 = vld [vmem:[%s1163_s1 + $0x8] sm:$0xff]  ;;  %v327_v45 = vld [vmem:[%s1164_s5 + $0x18] sm:$0xff]  ;;  %v601_v46 = vpack.c.bf16 %v65_v39, %v63_v38  ;;  %v603_v51 = vpack.c.bf16 %v70_v41, %v68_v40 }
   0xc   :  { %571 = vmatmul.mubr.msk.f32.vlgmr.msra.gmra.mrb[0].mxu1 %vm201_vm2, %v195_v36  ;;  %v325_v44 = vld [vmem:[%s1164_s5 + $0x8] sm:$0xff]  ;;  %v324_v48 = vld [vmem:[%s1164_s5] sm:$0xff]  ;;  %v326_v49 = vld [vmem:[%s1164_s5 + $0x10] sm:$0xff] }
   0xd   :  { %590 = vmatpush1.bf16.msra.mxu0 %v589_v20  ;;  %291 = vmatprep.mubr.f32.mxu1 %v688_v3  ;;  %v623_v47 = vpack.c.bf16 %v327_v45, %v325_v44  ;;  %v329_v50 = vld [vmem:[%s1164_s5 + $0x28] sm:$0xff]  ;;  %v69_v52 = vld [vmem:[%s1160_s3 + $0xd0] sm:$0xff]  ;;  %v625_v54 = vpack.c.bf16 %v326_v49, %v324_v48  ;;  %v331_v55 = vld [vmem:[%s1164_s5 + $0x38] sm:$0xff] }
   0xe   :  { %592 = vmatprep.subr.bf16.mxu0 %v591_v21  ;;  %v72_v53 = vld [vmem:[%s1160_s3 + $0xe8] sm:$0xff]  ;;  %v74_v56 = vld [vmem:[%s1160_s3 + $0xf8] sm:$0xff]  ;;  %v627_v57 = vpack.c.bf16 %v331_v55, %v329_v50  ;;  %v328_v58 = vld [vmem:[%s1164_s5 + $0x20] sm:$0xff]  ;;  %v605_v62 = vpack.c.bf16 %v69_v52, %v67_v42 }
   0xf   :  { %624 = vmatprep.subr.bf16.mxu1 %v623_v47  ;;  %v330_v59 = vld [vmem:[%s1164_s5 + $0x30] sm:$0xff]  ;;  %v333_v60 = vld [vmem:[%s1164_s5 + $0x48] sm:$0xff]  ;;  %v335_v61 = vld [vmem:[%s1164_s5 + $0x58] sm:$0xff]  ;;  %v607_v0 = vpack.c.bf16 %v74_v56, %v72_v53 }
  0x10   :  { %572 = vmatmul.mubr.msk.f32.gmra.mrb[2].mxu1 %vm201_vm2, %v196_v43  ;;  %v197_v63 = vld [vmem:[%s1163_s1 + $0x10] sm:$0xff]  ;;  %v71_v1 = vld [vmem:[%s1160_s3 + $0xe0] sm:$0xff]  ;;  %v76_v4 = vld [vmem:[%s1160_s3 + $0x108] sm:$0xff]  ;;  %v629_v5 = vpack.c.bf16 %v330_v59, %v328_v58  ;;  %v631_v7 = vpack.c.bf16 %v335_v61, %v333_v60 }
  0x11   :  { %594 = vmatpush1.bf16.msra.mxu0 %v593_v26  ;;  %297 = vmatprep.mubr.f32.mxu1 %v688_v3  ;;  %v73_v2 = vld [vmem:[%s1160_s3 + $0xf0] sm:$0xff]  ;;  %v78_v6 = vld [vmem:[%s1160_s3 + $0x118] sm:$0xff]  ;;  %v332_v8 = vld [vmem:[%s1164_s5 + $0x40] sm:$0xff] }
  0x12   :  { %596 = vmatprep.subr.bf16.mxu0 %v595_v27  ;;  %626 = vmatpush1.bf16.msra.mxu1 %v625_v54  ;;  %v334_v9 = vld [vmem:[%s1164_s5 + $0x50] sm:$0xff]  ;;  %v337_v10 = vld [vmem:[%s1164_s5 + $0x68] sm:$0xff]  ;;  %v339_v11 = vld [vmem:[%s1164_s5 + $0x78] sm:$0xff]  ;;  %v609_v12 = vpack.c.bf16 %v73_v2, %v71_v1  ;;  %v611_v14 = vpack.c.bf16 %v78_v6, %v76_v4 }
  0x13   :  { %628 = vmatprep.subr.bf16.mxu1 %v627_v57  ;;  %v198_v13 = vld [vmem:[%s1163_s1 + $0x18] sm:$0xff]  ;;  %v75_v15 = vld [vmem:[%s1160_s3 + $0x100] sm:$0xff]  ;;  %v77_v16 = vld [vmem:[%s1160_s3 + $0x110] sm:$0xff]  ;;  %v633_v18 = vpack.c.bf16 %v334_v9, %v332_v8  ;;  %v635_v20 = vpack.c.bf16 %v339_v11, %v337_v10 }
  0x14   :  { %573 = vmatmul.mubr.msk.f32.gmra.mrb[4].mxu1 %vm201_vm2, %v197_v63  ;;  %v80_v17 = vld [vmem:[%s1160_s3 + $0x128] sm:$0xff]  ;;  %v82_v19 = vld [vmem:[%s1160_s3 + $0x138] sm:$0xff]  ;;  %v336_v21 = vld [vmem:[%s1164_s5 + $0x60] sm:$0xff]  ;;  %v613_v25 = vpack.c.bf16 %v77_v16, %v75_v15 }
  0x15   :  { %598 = vmatpush1.bf16.msra.mxu0 %v597_v34  ;;  %303 = vmatprep.mubr.f32.mxu1 %v688_v3  ;;  %v338_v22 = vld [vmem:[%s1164_s5 + $0x70] sm:$0xff]  ;;  %v341_v23 = vld [vmem:[%s1164_s5 + $0x88] sm:$0xff]  ;;  %v343_v24 = vld [vmem:[%s1164_s5 + $0x98] sm:$0xff]  ;;  %v615_v26 = vpack.c.bf16 %v82_v19, %v80_v17 }
  0x16   :  { %600 = vmatprep.subr.bf16.mxu0 %v599_v37  ;;  %630 = vmatpush1.bf16.msra.mxu1 %v629_v5  ;;  %v79_v27 = vld [vmem:[%s1160_s3 + $0x120] sm:$0xff]  ;;  %v81_v28 = vld [vmem:[%s1160_s3 + $0x130] sm:$0xff]  ;;  %v84_v29 = vld [vmem:[%s1160_s3 + $0x148] sm:$0xff]  ;;  %v637_v30 = vpack.c.bf16 %v338_v22, %v336_v21  ;;  %v639_v32 = vpack.c.bf16 %v343_v24, %v341_v23 }
  0x17   :  { %632 = vmatprep.subr.bf16.mxu1 %v631_v7  ;;  %v86_v31 = vld [vmem:[%s1160_s3 + $0x158] sm:$0xff]  ;;  %v340_v33 = vld [vmem:[%s1164_s5 + $0x80] sm:$0xff]  ;;  %v342_v34 = vld [vmem:[%s1164_s5 + $0x90] sm:$0xff]  ;;  %v617_v37 = vpack.c.bf16 %v81_v28, %v79_v27 }
  0x18   :  { %574 = vmatmul.mubr.msk.f32.gmra.mrb[6].mxu1 %vm201_vm2, %v198_v13  ;;  %v345_v35 = vld [vmem:[%s1164_s5 + $0xa8] sm:$0xff]  ;;  %v347_v36 = vld [vmem:[%s1164_s5 + $0xb8] sm:$0xff]  ;;  %v619_v38 = vpack.c.bf16 %v86_v31, %v84_v29  ;;  %v83_v39 = vld [vmem:[%s1160_s3 + $0x140] sm:$0xff]  ;;  %v641_v41 = vpack.c.bf16 %v342_v34, %v340_v33 }
  0x19   :  { %602 = vmatpush1.bf16.msra.mxu0 %v601_v46  ;;  %v85_v40 = vld [vmem:[%s1160_s3 + $0x150] sm:$0xff]  ;;  %v643_v42 = vpack.c.bf16 %v347_v36, %v345_v35  ;;  %v344_v43 = vld [vmem:[%s1164_s5 + $0xa0] sm:$0xff]  ;;  %v349_v45 = vld [vmem:[%s1164_s5 + $0xc8] sm:$0xff] }
  0x1a   :  { %604 = vmatprep.subr.bf16.mxu0 %v603_v51  ;;  %634 = vmatpush1.bf16.msra.mxu1 %v633_v18  ;;  %v346_v44 = vld [vmem:[%s1164_s5 + $0xb0] sm:$0xff]  ;;  %v351_v46 = vld [vmem:[%s1164_s5 + $0xd8] sm:$0xff]  ;;  %v621_v47 = vpack.c.bf16 %v85_v40, %v83_v39  ;;  %v88_v49 = vld [vmem:[%s1160_s3 + $0x168] sm:$0xf] }
  0x1b   :  { %636 = vmatprep.subr.bf16.mxu1 %v635_v20  ;;  %v645_v48 = vpack.c.bf16 %v346_v44, %v344_v43  ;;  %v647_v50 = vpack.c.bf16 %v351_v46, %v349_v45  ;;  %v348_v51 = vld [vmem:[%s1164_s5 + $0xc0] sm:$0xff]  ;;  %v350_v52 = vld [vmem:[%s1164_s5 + $0xd0] sm:$0xff]  ;;  %v353_v53 = vld [vmem:[%s1164_s5 + $0xe8] sm:$0xff] }
  0x1c   :  { %v355_v54 = vld [vmem:[%s1164_s5 + $0xf8] sm:$0xff]  ;;  %v87_v55 = vld [vmem:[%s1160_s3 + $0x160] sm:$0xf]  ;;  %v649_v56 = vpack.c.bf16 %v350_v52, %v348_v51  ;;  %v354_v60 = vld [vmem:[%s1164_s5 + $0xf0] sm:$0xff] }
  0x1d   :  { %606 = vmatpush1.bf16.msra.mxu0 %v605_v62  ;;  %v37_v57 = vld [vmem:[%s1161_s0] sm:$0xff]  ;;  %v651_v58 = vpack.c.bf16 %v355_v54, %v353_v53  ;;  %v40_v61 = vld [vmem:[%s1161_s0 + $0x18] sm:$0xff]  ;;  %v357_v62 = vld [vmem:[%s1164_s5 + $0x108] sm:$0xff] }
  0x1e   :  { %608 = vmatprep.subr.bf16.mxu0 %v607_v0  ;;  %638 = vmatpush1.bf16.msra.mxu1 %v637_v30  ;;  %v352_v59 = vld [vmem:[%s1164_s5 + $0xe0] sm:$0xff]  ;;  %v359_v63 = vld [vmem:[%s1164_s5 + $0x118] sm:$0xff]  ;;  %v39_v1 = vld [vmem:[%s1161_s0 + $0x10] sm:$0xff] }
  0x1f   :  { %640 = vmatprep.subr.bf16.mxu1 %v639_v32  ;;  %v653_v0 = vpack.c.bf16 %v354_v60, %v352_v59  ;;  %v655_v2 = vpack.c.bf16 %v359_v63, %v357_v62  ;;  %v356_v4 = vld [vmem:[%s1164_s5 + $0x100] sm:$0xff]  ;;  %v358_v5 = vld [vmem:[%s1164_s5 + $0x110] sm:$0xff]  ;;  %v42_v6 = vld [vmem:[%s1161_s0 + $0x28] sm:$0xff] }
  0x20   :  { %v361_v7 = vld [vmem:[%s1164_s5 + $0x128] sm:$0xff]  ;;  %v363_v8 = vld [vmem:[%s1164_s5 + $0x138] sm:$0xff]  ;;  %v657_v9 = vpack.c.bf16 %v358_v5, %v356_v4  ;;  %v41_v10 = vld [vmem:[%s1161_s0 + $0x20] sm:$0xff] }
  0x21   :  { %610 = vmatpush1.bf16.msra.mxu0 %v609_v12  ;;  %v659_v11 = vpack.c.bf16 %v363_v8, %v361_v7  ;;  %v360_v12 = vld [vmem:[%s1164_s5 + $0x120] sm:$0xff]  ;;  %v362_v13 = vld [vmem:[%s1164_s5 + $0x130] sm:$0xff]  ;;  %v367_v15 = vld [vmem:[%s1164_s5 + $0x158] sm:$0xff] }
  0x22   :  { %612 = vmatprep.subr.bf16.mxu0 %v611_v14  ;;  %642 = vmatpush1.bf16.msra.mxu1 %v641_v41  ;;  %v365_v14 = vld [vmem:[%s1164_s5 + $0x148] sm:$0xff]  ;;  %v661_v16 = vpack.c.bf16 %v362_v13, %v360_v12  ;;  %v364_v18 = vld [vmem:[%s1164_s5 + $0x140] sm:$0xff]  ;;  %v366_v19 = vld [vmem:[%s1164_s5 + $0x150] sm:$0xff] }
  0x23   :  { %644 = vmatprep.subr.bf16.mxu1 %v643_v42  ;;  %v663_v17 = vpack.c.bf16 %v367_v15, %v365_v14  ;;  %v369_v20 = vld [vmem:[%s1164_s5 + $0x168] sm:$0xff]  ;;  %v371_v21 = vld [vmem:[%s1164_s5 + $0x178] sm:$0xff]  ;;  %v665_v22 = vpack.c.bf16 %v366_v19, %v364_v18  ;;  %v368_v24 = vld [vmem:[%s1164_s5 + $0x160] sm:$0xff] }
  0x24   :  { %v667_v23 = vpack.c.bf16 %v371_v21, %v369_v20  ;;  %v375_v27 = vld [vmem:[%s1164_s5 + $0x198] sm:$0xff]  ;;  %v372_v29 = vld [vmem:[%s1164_s5 + $0x180] sm:$0xff]  ;;  %v374_v30 = vld [vmem:[%s1164_s5 + $0x190] sm:$0xff] }
  0x25   :  { %614 = vmatpush1.bf16.msra.mxu0 %v613_v25  ;;  %v673_v31 = vpack.c.bf16 %v374_v30, %v372_v29  ;;  %v377_v32 = vld [vmem:[%s1164_s5 + $0x1a8] sm:$0xff]  ;;  %v379_v33 = vld [vmem:[%s1164_s5 + $0x1b8] sm:$0xff]  ;;  %v376_v35 = vld [vmem:[%s1164_s5 + $0x1a0] sm:$0xff] }
  0x26   :  { %616 = vmatprep.subr.bf16.mxu0 %v615_v26  ;;  %646 = vmatpush1.bf16.msra.mxu1 %v645_v48  ;;  %v373_v26 = vld [vmem:[%s1164_s5 + $0x188] sm:$0xff]  ;;  %v675_v34 = vpack.c.bf16 %v379_v33, %v377_v32  ;;  %v378_v36 = vld [vmem:[%s1164_s5 + $0x1b0] sm:$0xff]  ;;  %v383_v39 = vld [vmem:[%s1164_s5 + $0x1d8] sm:$0xff] }
  0x27   :  { %648 = vmatprep.subr.bf16.mxu1 %v647_v50  ;;  %v671_v28 = vpack.c.bf16 %v375_v27, %v373_v26  ;;  %v380_v41 = vld [vmem:[%s1164_s5 + $0x1c0] sm:$0xff]  ;;  %v382_v42 = vld [vmem:[%s1164_s5 + $0x1d0] sm:$0xff]  ;;  %v385_v44 = vld [vmem:[%s1164_s5 + $0x1e8] sm:$0xff] }
  0x28   :  { %v681_v43 = vpack.c.bf16 %v382_v42, %v380_v41  ;;  %v387_v45 = vld [vmem:[%s1164_s5 + $0x1f8] sm:$0xff]  ;;  %v386_v48 = vld [vmem:[%s1164_s5 + $0x1f0] sm:$0xff]  ;;  %v32_v59 = vld [vmem:[%s1165_s2 + $0x8] sm:$0xff] }
  0x29   :  { %618 = vmatpush1.bf16.msra.mxu0 %v617_v37  ;;  %v677_v37 = vpack.c.bf16 %v378_v36, %v376_v35  ;;  %v683_v46 = vpack.c.bf16 %v387_v45, %v385_v44  ;;  %v460_v26 = vld [vmem:[%s1167_s6] sm:$0x3f] }
  0x2a   :  { %620 = vmatprep.subr.bf16.mxu0 %v619_v38  ;;  %650 = vmatpush1.bf16.msra.mxu1 %v649_v56  ;;  %v381_v38 = vld [vmem:[%s1164_s5 + $0x1c8] sm:$0xff]  ;;  %v459_v30 = vld [vmem:[%s1168_s7] sm:$0x3] }
  0x2b   :  { %652 = vmatprep.subr.bf16.mxu1 %v651_v58  ;;  %v679_v40 = vpack.c.bf16 %v383_v39, %v381_v38  ;;  %v31_v58 = vld [vmem:[%s1165_s2] sm:$0xff] }
  0x2d   :  { %622 = vmatpush1.bf16.msra.mxu0 %v621_v47  ;;  %v384_v47 = vld [vmem:[%s1164_s5 + $0x1e0] sm:$0xff] }
  0x2e   :  { %564 = vmatprep.subr.msk.mxu0 %vm99_vm3, %v88_v49  ;;  %654 = vmatpush1.bf16.msra.mxu1 %v653_v0  ;;  %v685_v49 = vpack.c.bf16 %v386_v48, %v384_v47  ;;  %v33_v0 = vld [vmem:[%s1165_s2 + $0x10] sm:$0xff] }
  0x2f   :  { %656 = vmatprep.subr.bf16.mxu1 %v655_v2  ;;  %v34_v2 = vld [vmem:[%s1165_s2 + $0x18] sm:$0xff] }
  0x31   :  { %565 = vmatpush1.msk.msra.mxu0 %vm99_vm3, %v87_v55 }
  0x32   :  { %171 = vmatmul.mubr.f32.vlgmr.msra.gmra.mrb[0].mxu0 %v37_v57  ;;  %658 = vmatpush1.bf16.msra.mxu1 %v657_v9  ;;  %v35_v9 = vld [vmem:[%s1165_s2 + $0x20] sm:$0xff] }
  0x33   :  { %567 = vmatprep.mubr.msk.f32.mxu0 %vm89_vm0, %v40_v61  ;;  %660 = vmatprep.subr.bf16.mxu1 %v659_v11  ;;  %v36_v11 = vld [vmem:[%s1165_s2 + $0x28] sm:$0xff] }
  0x36   :  { %177 = vmatmul.mubr.f32.gmra.mrb[2].mxu0 %v39_v1  ;;  %662 = vmatpush1.bf16.msra.mxu1 %v661_v16 }
  0x37   :  { %568 = vmatprep.mubr.msk.f32.mxu0 %vm89_vm0, %v42_v6  ;;  %664 = vmatprep.subr.bf16.mxu1 %v663_v17 }
  0x3a   :  { %183 = vmatmul.mubr.f32.gmra.mrb[4].mxu0 %v41_v10  ;;  %666 = vmatpush1.bf16.msra.mxu1 %v665_v22 }
  0x3b   :  { %537 = vmatprep.mubr.f32.mxu0 %v688_v3  ;;  %668 = vmatprep.subr.bf16.mxu1 %v667_v23  ;;  %v370_v3 = vld [vmem:[%s1164_s5 + $0x170] sm:$0xff] }
  0x3c   :  { %v669_v25 = vpack.c.bf16 %v370_v3, %v368_v24  ;;  %v461_v3 = vld [vmem:[%s1167_s6 + $0x8] sm:$0x3f] }
  0x3e   :  { %670 = vmatpush1.bf16.msra.mxu1 %v669_v25 }
  0x3f   :  { %672 = vmatprep.subr.bf16.mxu1 %v671_v28 }
  0x42   :  { %674 = vmatpush1.bf16.msra.mxu1 %v673_v31 }
  0x43   :  { %676 = vmatprep.subr.bf16.mxu1 %v675_v34 }
  0x46   :  { %678 = vmatpush1.bf16.msra.mxu1 %v677_v37 }
  0x47   :  { %680 = vmatprep.subr.bf16.mxu1 %v679_v40 }
  0x4a   :  { %682 = vmatpush1.bf16.msra.mxu1 %v681_v43 }
  0x4b   :  { %684 = vmatprep.subr.bf16.mxu1 %v683_v46 }
  0x4e   :  { %686 = vmatpush1.bf16.msra.mxu1 %v685_v49 }
  0xdf   :  { %v287_v50 = vpop.f32.mrb[0].mxu1 }
  0xe0   :  { %v289_v51 = vpop.f32.mrb[1].mxu1 }
  0xe3   :  { %v293_v52 = vpop.f32.mrb[2].mxu1 }
  0xe4   :  { %v295_v53 = vpop.f32.mrb[3].mxu1 }
  0xe7   :  { %v299_v54 = vpop.f32.mrb[4].mxu1 }
  0xe8   :  { %v301_v55 = vpop.f32.mrb[5].mxu1 }
  0xeb   :  { %v305_v56 = vpop.f32.mrb[6].mxu1 }
  0xec   :  { %v307_v57 = vpop.f32.mrb[7].mxu1 }
 0x105   :  { %v172_v60 = vpop.f32.mrb[0].mxu0 }
 0x106   :  { %v189_v61 = vadd.f32 %v172_v60, %v31_v58  ;;  %v174_v62 = vpop.f32.mrb[1].mxu0 }
 0x107   :  { %v190_v63 = vadd.f32 %v174_v62, %v32_v59 }
 0x108   :  { %v310_v1 = vmul.f32 %v287_v50, %v189_v61 }
 0x109   :  { %v311_v4 = vmul.f32 %v289_v51, %v190_v63  ;;  %v178_v5 = vpop.f32.mrb[2].mxu0 }
 0x10a   :  { %v191_v6 = vadd.f32 %v178_v5, %v33_v0  ;;  %v180_v7 = vpop.f32.mrb[3].mxu0 }
 0x10b   :  { %v192_v8 = vadd.f32 %v180_v7, %v34_v2 }
 0x10c   :  { %v312_v10 = vmul.f32 %v293_v52, %v191_v6 }
 0x10d   :  { %v313_v12 = vmul.f32 %v295_v53, %v192_v8  ;;  %v184_v13 = vpop.f32.mrb[4].mxu0 }
 0x10e   :  { %v316_v14 = vadd.f32 %v312_v10, %v310_v1  ;;  %v193_v15 = vadd.f32 %v184_v13, %v35_v9  ;;  %v186_v16 = vpop.f32.mrb[5].mxu0 }
 0x10f   :  { %v317_v17 = vadd.f32 %v313_v12, %v311_v4  ;;  %v194_v18 = vadd.f32 %v186_v16, %v36_v11 }
 0x110   :  { %v314_v19 = vmul.f32 %v299_v54, %v193_v15 }
 0x111   :  { %v315_v20 = vmul.f32 %v301_v55, %v194_v18 }
 0x112   :  { %v318_v21 = vadd.f32 %v316_v14, %v314_v19 }
 0x113   :  { %v319_v22 = vadd.f32 %v317_v17, %v315_v20 }
 0x114   :  { %v320_v23 = vadd.f32 %v318_v21, %v305_v56 }
 0x115   :  { %v321_v24 = vadd.f32 %v319_v22, %v307_v57 }
 0x116   :  { %322 = vst [vmem:[%s1166_s8] sm:$0x3f] %v320_v23 }
 0x117   :  { %323 = vst [vmem:[%s1166_s8 + $0x8] sm:$0x3f] %v321_v24  ;;  %452 = vmatprep.mubr.f32.mxu1 %v321_v24 }
 0x118   :  { %453 = vmatmul.mubr.f32.vlgmr.msra.gmra.mrb[8].mxu1 %v320_v23 }
 0x1eb   :  { %v454_v25 = vpop.f32.mrb[8].mxu1 }
 0x1ec   :  { %v456_v27 = vpop.f32.mrb[9].mxu1  ;;  %v462_v29 = vmul.f32 %v460_v26, %v454_v25 }
 0x1ed   :  { %v463_v28 = vmul.f32 %v461_v3, %v456_v27 }
 0x1ef   :  { %575 = vmatprep.subr.msk.mxu0 %vm214_vm1, %v463_v28 }
 0x1f0   :  { %576 = vmatpush1.msk.msra.mxu0 %vm214_vm1, %v462_v29 }
 0x1f1   :  { %577 = vmatmul.mubr.msk.f32.vlgmr.msra.gmra.mrb[6].mxu0 %vm201_vm2, %v459_v30 }
 0x2c4   :  { %v539_v31 = vpop.f32.mrb[6].mxu0 }
 0x2c5   :  { %v541_v32 = vpop.f32.mrb[7].mxu0 }
 0x2c6   :  { %v546_v33 = vcombine.low %v539_v31, %v541_v32 }
 0x2c8   :  { %578 = vst.sshfl [vmem:[%s1169_s9] sm:$0x33 pattern:$0x76325410] %v546_v33 }

</bundles_post_ra>
